<compile_context>
chip_gen: v7x
topology: tpu7x:2x2x1
jax: 0.10.0
libtpu: 0.0.40
codegen_flags: <defaults>
</compile_context>

<pallas_src>
import functools

import jax
import jax.numpy as jnp
import numpy as np
from jax.experimental import pallas as pl
from jax.experimental.pallas import tpu as pltpu


def _round_up(x, m):
    return ((x + m - 1) // m) * m


# ----------------------------------------------------------------------------
# Pallas kernel: one KANLinear layer on a (row tile, out tile) block
# ----------------------------------------------------------------------------
def kan_linear_kernel(x_ref, grid_ref, invden_ref, w_ref, o_ref, *,
                      spline_order, matmul_dtype):
    # x_ref     : (TN, In)                         row tile of inputs
    # grid_ref  : (n_knots, In)                    knot grid (features on lanes)
    # invden_ref: (spline_order*(n_knots-1), In)   precomputed 1/(g[m+k]-g[m])
    # w_ref     : ((1+coeff)*In, TOUT)             [base_weight.T ; ws_flat]
    # o_ref     : (TN, TOUT)
    x = x_ref[...]
    n_knots = grid_ref.shape[0]
    nrows = n_knots - 1

    # ---- base-branch activation: SiLU(x) = x * sigmoid(x) -------------------
    silu = x / (1.0 + jnp.exp(-x))

    # ---- B-spline bases (Cox–de Boor), pure VPU -----------------------------
    # Precompute x - g_m once per knot and reuse at every recursion level.
    dif = [x - grid_ref[m:m + 1, :] for m in range(n_knots)]

    # degree-0 indicator:  g[j] <= x < g[j+1]
    bases = [((dif[j] >= 0.0) & (dif[j + 1] < 0.0)).astype(x.dtype)
             for j in range(nrows)]

    # recursion with hoisted reciprocal denominators (multiply, never divide)
    for k in range(1, spline_order + 1):
        base_row = (k - 1) * nrows
        new_bases = []
        for j in range(len(bases) - 1):
            d_j = invden_ref[base_row + j: base_row + j + 1, :]
            d_j1 = invden_ref[base_row + j + 1: base_row + j + 2, :]
            # (x - g[j]) * d[k,j] * B[j]  +  (g[j+k+1] - x) * d[k,j+1] * B[j+1]
            new_bases.append(dif[j] * d_j * bases[j]
                             - dif[j + k + 1] * d_j1 * bases[j + 1])
        bases = new_bases

    # ---- single fused long-K MXU matmul -------------------------------------
    # column order: [SiLU block (In)] [coeff 0 (In)] ... [coeff-1 (In)]
    # which matches the row order of w_ref (base rows, then coeff-major spline).
    feats = jnp.concatenate([silu] + bases, axis=-1)       # (TN, (1+coeff)*In)
    acc = jnp.dot(feats.astype(matmul_dtype),
                  w_ref[...].astype(matmul_dtype),
                  preferred_element_type=jnp.float32)
    o_ref[...] = acc.astype(o_ref.dtype)


def _choose_tile_out(out_pad, k_total, budget_bytes=24 << 20):
    """Largest 128-multiple output tile whose double-buffered weight block
    ((k_total, tile) f32 x 2) stays inside the VMEM budget."""
    best = 128
    for cand in (128, 256, 512):
        if out_pad % cand == 0 and 2 * k_total * cand * 4 <= budget_bytes:
            best = cand
    return min(best, out_pad)


def kan_linear_forward(x, params, *, spline_order, tile_n, tile_out=None,
                       matmul_dtype=jnp.float32):
    grid_t = params["grid_t"]      # (n_knots, In_pad)
    invden = params["invden"]      # (so*(n_knots-1), In_pad)
    w_all = params["w_all"]        # ((1+coeff)*In_pad, Out_pad)

    N, In = x.shape
    K_total, Out = w_all.shape
    n_knots = grid_t.shape[0]
    n_den = invden.shape[0]
    assert N % tile_n == 0, "rows must be pre-padded to a multiple of tile_n"
    assert K_total % In == 0

    to = tile_out if tile_out is not None else _choose_tile_out(Out, K_total)
    if Out % to != 0:
        to = Out

    kernel = functools.partial(kan_linear_kernel, spline_order=spline_order,
                               matmul_dtype=matmul_dtype)
    return pl.pallas_call(
        kernel,
        out_shape=jax.ShapeDtypeStruct((N, Out), x.dtype),
        grid_spec=pltpu.PrefetchScalarGridSpec(
            num_scalar_prefetch=0,
            grid=(N // tile_n, Out // to),
            in_specs=[
                pl.BlockSpec((tile_n, In), lambda i, j: (i, 0)),
                pl.BlockSpec((n_knots, In), lambda i, j: (0, 0)),
                pl.BlockSpec((n_den, In), lambda i, j: (0, 0)),
                pl.BlockSpec((K_total, to), lambda i, j: (0, j)),
            ],
            out_specs=pl.BlockSpec((tile_n, to), lambda i, j: (i, j)),
        ),
        compiler_params=pltpu.CompilerParams(
            dimension_semantics=("parallel", "parallel"),
            vmem_limit_bytes=64 * 1024 * 1024,
        ),
    )(x, grid_t, invden, w_all)


# ----------------------------------------------------------------------------
# Parameter construction (deterministic, synthetic — mirrors shapes in
# KANLinear.__init__; the exact torch RNG / curve2coeff lstsq init is not
# replayed)
# ----------------------------------------------------------------------------
def init_kan_params(key, width, grid_size, spline_order, grid_range=(-1.0, 1.0),
                    scale_base=1.0, scale_spline=1.0):
    h = (grid_range[1] - grid_range[0]) / grid_size
    knots = (
        jnp.arange(-spline_order, grid_size + spline_order + 1, dtype=jnp.float32) * h
        + grid_range[0]
    )
    coeff = grid_size + spline_order
    layers = []
    for fin, fout in zip(width[:-1], width[1:]):
        key, k1, k2 = jax.random.split(key, 3)
        a = scale_base * (6.0 / (fin + fout)) ** 0.5  # xavier_uniform bound
        base_w = jax.random.uniform(k1, (fout, fin), jnp.float32, -a, a)
        # TODO(synk): torch init uses curve2coeff (torch.linalg.lstsq) on random
        # noise; a deterministic small random init is used here instead.
        spline_w = 0.1 * jax.random.normal(k2, (fout, fin, coeff), jnp.float32)
        spline_scaler = jnp.full((fout, fin), scale_spline, jnp.float32)
        grid = jnp.broadcast_to(knots[None, :], (fin, knots.shape[0]))  # (in, n_knots)
        layers.append(dict(base_w=base_w, spline_w=spline_w,
                           spline_scaler=spline_scaler, grid=grid))
    return layers


def prepare_kan_params(layers, spline_order, lane_pad=128):
    """Pre-fold weight transforms once: scale, transpose, flatten, stack with
    the base weight, lane-pad, and precompute the Cox–de Boor reciprocal
    denominators."""
    prepared = []
    for p in layers:
        base_w = p["base_w"]            # (out, in)
        spline_w = p["spline_w"]        # (out, in, coeff)
        scaler = p["spline_scaler"]     # (out, in)
        grid = p["grid"]                # (in, n_knots)
        fout, fin = base_w.shape
        coeff = spline_w.shape[-1]
        n_knots = grid.shape[1]

        in_pad = _round_up(fin, lane_pad)
        out_pad = _round_up(fout, lane_pad)

        # base weight, transposed + zero-padded  -> (in_pad, out_pad)
        wb_t = jnp.zeros((in_pad, out_pad), jnp.float32)
        wb_t = wb_t.at[:fin, :fout].set(base_w.T)

        # scaled spline weight -> (coeff, in_pad, out_pad) -> (coeff*in_pad, out_pad)
        scaled = spline_w * scaler[:, :, None]            # (out, in, coeff)
        ws = jnp.transpose(scaled, (2, 1, 0))             # (coeff, in, out)
        ws_p = jnp.zeros((coeff, in_pad, out_pad), jnp.float32)
        ws_p = ws_p.at[:, :fin, :fout].set(ws)
        ws_flat = ws_p.reshape(coeff * in_pad, out_pad)

        # single stacked weight for the fused matmul: rows = [base ; spline]
        w_all = jnp.concatenate([wb_t, ws_flat], axis=0)  # ((1+coeff)*in_pad, out_pad)

        # knot grid, features on lanes; padded features reuse a valid knot
        # vector so the recursion stays finite (their weights are zero anyway)
        grid_t = jnp.zeros((n_knots, in_pad), jnp.float32)
        grid_t = grid_t.at[:, :fin].set(grid.T)
        grid_t = grid_t.at[:, fin:].set(grid.T[:, :1])

        # reciprocal denominators d[k, m] = 1/(g[m+k]-g[m]), flattened to 2-D
        nrows = n_knots - 1
        invden = np.zeros((spline_order * nrows, in_pad), np.float32)
        g_np = np.asarray(grid_t)
        for k in range(1, spline_order + 1):
            for m in range(n_knots - k):
                invden[(k - 1) * nrows + m, :] = 1.0 / (g_np[m + k, :] - g_np[m, :])
        invden = jnp.asarray(invden)

        prepared.append(dict(grid_t=grid_t, invden=invden, w_all=w_all,
                             in_true=fin, out_true=fout))
    return prepared


# ----------------------------------------------------------------------------
# KAN forward (matches KAN.forward with update_grid=False)
# ----------------------------------------------------------------------------
def kan_forward(x_bct, prepared, spline_order, tile_n=128, tile_out=None):
    B, C, T = x_bct.shape
    N = B * C
    x = x_bct.reshape(N, T).astype(jnp.float32)

    # pad rows once to a multiple of the row tile (shared by all layers)
    tn = min(tile_n, _round_up(N, 8))
    n_pad = _round_up(N, tn)
    if n_pad != N:
        x = jnp.pad(x, ((0, n_pad - N), (0, 0)))

    # pad features once for layer 0; each layer's padded output columns are
    # exactly zero, so they feed the next layer's padded input directly
    in0_pad = prepared[0]["grid_t"].shape[1]
    assert T == prepared[0]["in_true"]
    if in0_pad != T:
        x = jnp.pad(x, ((0, 0), (0, in0_pad - T)))

    for p in prepared:
        x = kan_linear_forward(x, p, spline_order=spline_order,
                               tile_n=tn, tile_out=tile_out)

    U = prepared[-1]["out_true"]
    return x[:N, :U].reshape(B, C, U)


# ----------------------------------------------------------------------------
# Pure-JAX reference (for correctness check) — operates on unpadded params
# ----------------------------------------------------------------------------
def _b_splines_ref(x, grid, spline_order):
    xe = x[:, :, None]
    bases = ((xe >= grid[None, :, :-1]) & (xe < grid[None, :, 1:])).astype(x.dtype)
    for k in range(1, spline_order + 1):
        bases = (
            (xe - grid[None, :, : -(k + 1)])
            / (grid[None, :, k:-1] - grid[None, :, : -(k + 1)])
            * bases[:, :, :-1]
            + (grid[None, :, k + 1:] - xe)
            / (grid[None, :, k + 1:] - grid[None, :, 1:-k])
            * bases[:, :, 1:]
        )
    return bases


def kan_forward_ref(x_bct, layers, spline_order):
    B, C, T = x_bct.shape
    x = x_bct.reshape(B * C, T)
    for p in layers:
        base = (x / (1.0 + jnp.exp(-x))) @ p["base_w"].T
        bs = _b_splines_ref(x, p["grid"], spline_order)
        scaled = p["spline_w"] * p["spline_scaler"][:, :, None]
        spline = bs.reshape(x.shape[0], -1) @ scaled.reshape(scaled.shape[0], -1).T
        x = base + spline
    return x.reshape(B, C, x.shape[1])


if __name__ == "__main__":
    key = jax.random.PRNGKey(0)
    B, C = 2, 4
    width = [16, 32, 16]            # width[0] must equal T
    grid = 3
    # NOTE: KAN.__init__ passes spline_order=grid (not k) to KANLinear; reproduce that.
    grid_size = grid
    spline_order = grid

    kx, kp = jax.random.split(key)
    x = jax.random.uniform(kx, (B, C, width[0]), jnp.float32, -1.0, 1.0)
    layers = init_kan_params(kp, width, grid_size, spline_order)
    prepared = prepare_kan_params(layers, spline_order)

    out = kan_forward(x, prepared, spline_order)
    out = jax.block_until_ready(out)
    assert out.shape == (B, C, width[-1])

    ref = kan_forward_ref(x, layers, spline_order)
    np.testing.assert_allclose(np.asarray(out), np.asarray(ref), rtol=1e-5, atol=1e-5)

    print("KERNEL_OK")
</pallas_src>

<mosaic_0001>
module attributes {stable_mosaic.version = 11 : i64} {
  func.func @kan_linear_kernel(%arg0: i32, %arg1: i32, %arg2: memref<8x128xf32, #tpu.memory_space<vmem>>, %arg3: memref<10x128xf32, #tpu.memory_space<vmem>>, %arg4: memref<27x128xf32, #tpu.memory_space<vmem>>, %arg5: memref<896x128xf32, #tpu.memory_space<vmem>>, %arg6: memref<8x128xf32, #tpu.memory_space<vmem>>) attributes {dimension_semantics = [#tpu.dimension_semantics<parallel>, #tpu.dimension_semantics<parallel>], iteration_bounds = array<i64: 1, 1>, scalar_prefetch = 0 : i64, scratch_operands = 0 : i64, tpu.core_type = #tpu.core_type<tc>, window_params = [{transform_indices = @transform_0, window_bounds = array<i64: 8, 128>}, {pipeline_mode = #tpu.pipeline_mode<synchronous>, transform_indices = @transform_1, window_bounds = array<i64: 10, 128>}, {pipeline_mode = #tpu.pipeline_mode<synchronous>, transform_indices = @transform_2, window_bounds = array<i64: 27, 128>}, {transform_indices = @transform_3, window_bounds = array<i64: 896, 128>}, {transform_indices = @transform_4, window_bounds = array<i64: 8, 128>}]} {
    %c0 = arith.constant 0 : index
    %c0_0 = arith.constant 0 : index
    %0 = vector.load %arg2[%c0, %c0_0] : memref<8x128xf32, #tpu.memory_space<vmem>>, vector<8x128xf32>
    %cst = arith.constant 0.000000e+00 : f32
    %1 = vector.broadcast %cst : f32 to vector<8x128xf32>
    %2 = arith.subf %1, %0 : vector<8x128xf32>
    %3 = math.exp %2 : vector<8x128xf32>
    %cst_1 = arith.constant 1.000000e+00 : f32
    %4 = vector.broadcast %cst_1 : f32 to vector<8x128xf32>
    %5 = arith.addf %4, %3 : vector<8x128xf32>
    %6 = arith.divf %0, %5 : vector<8x128xf32>
    %c0_2 = arith.constant 0 : index
    %c0_3 = arith.constant 0 : index
    %7 = vector.load %arg3[%c0_2, %c0_3] : memref<10x128xf32, #tpu.memory_space<vmem>>, vector<1x128xf32>
    %8 = vector.broadcast %7 : vector<1x128xf32> to vector<8x128xf32>
    %9 = arith.subf %0, %8 : vector<8x128xf32>
    %c1 = arith.constant 1 : index
    %c0_4 = arith.constant 0 : index
    %10 = vector.load %arg3[%c1, %c0_4] : memref<10x128xf32, #tpu.memory_space<vmem>>, vector<1x128xf32>
    %11 = vector.broadcast %10 : vector<1x128xf32> to vector<8x128xf32>
    %12 = arith.subf %0, %11 : vector<8x128xf32>
    %c2 = arith.constant 2 : index
    %c0_5 = arith.constant 0 : index
    %13 = vector.load %arg3[%c2, %c0_5] : memref<10x128xf32, #tpu.memory_space<vmem>>, vector<1x128xf32>
    %14 = vector.broadcast %13 : vector<1x128xf32> to vector<8x128xf32>
    %15 = arith.subf %0, %14 : vector<8x128xf32>
    %c3 = arith.constant 3 : index
    %c0_6 = arith.constant 0 : index
    %16 = vector.load %arg3[%c3, %c0_6] : memref<10x128xf32, #tpu.memory_space<vmem>>, vector<1x128xf32>
    %17 = vector.broadcast %16 : vector<1x128xf32> to vector<8x128xf32>
    %18 = arith.subf %0, %17 : vector<8x128xf32>
    %c4 = arith.constant 4 : index
    %c0_7 = arith.constant 0 : index
    %19 = vector.load %arg3[%c4, %c0_7] : memref<10x128xf32, #tpu.memory_space<vmem>>, vector<1x128xf32>
    %20 = vector.broadcast %19 : vector<1x128xf32> to vector<8x128xf32>
    %21 = arith.subf %0, %20 : vector<8x128xf32>
    %c5 = arith.constant 5 : index
    %c0_8 = arith.constant 0 : index
    %22 = vector.load %arg3[%c5, %c0_8] : memref<10x128xf32, #tpu.memory_space<vmem>>, vector<1x128xf32>
    %23 = vector.broadcast %22 : vector<1x128xf32> to vector<8x128xf32>
    %24 = arith.subf %0, %23 : vector<8x128xf32>
    %c6 = arith.constant 6 : index
    %c0_9 = arith.constant 0 : index
    %25 = vector.load %arg3[%c6, %c0_9] : memref<10x128xf32, #tpu.memory_space<vmem>>, vector<1x128xf32>
    %26 = vector.broadcast %25 : vector<1x128xf32> to vector<8x128xf32>
    %27 = arith.subf %0, %26 : vector<8x128xf32>
    %c7 = arith.constant 7 : index
    %c0_10 = arith.constant 0 : index
    %28 = vector.load %arg3[%c7, %c0_10] : memref<10x128xf32, #tpu.memory_space<vmem>>, vector<1x128xf32>
    %29 = vector.broadcast %28 : vector<1x128xf32> to vector<8x128xf32>
    %30 = arith.subf %0, %29 : vector<8x128xf32>
    %c8 = arith.constant 8 : index
    %c0_11 = arith.constant 0 : index
    %31 = vector.load %arg3[%c8, %c0_11] : memref<10x128xf32, #tpu.memory_space<vmem>>, vector<1x128xf32>
    %32 = vector.broadcast %31 : vector<1x128xf32> to vector<8x128xf32>
    %33 = arith.subf %0, %32 : vector<8x128xf32>
    %c9 = arith.constant 9 : index
    %c0_12 = arith.constant 0 : index
    %34 = vector.load %arg3[%c9, %c0_12] : memref<10x128xf32, #tpu.memory_space<vmem>>, vector<1x128xf32>
    %35 = vector.broadcast %34 : vector<1x128xf32> to vector<8x128xf32>
    %36 = arith.subf %0, %35 : vector<8x128xf32>
    %cst_13 = arith.constant 0.000000e+00 : f32
    %37 = vector.broadcast %cst_13 : f32 to vector<8x128xf32>
    %38 = arith.cmpf oge, %9, %37 : vector<8x128xf32>
    %cst_14 = arith.constant 0.000000e+00 : f32
    %39 = vector.broadcast %cst_14 : f32 to vector<8x128xf32>
    %40 = arith.cmpf olt, %12, %39 : vector<8x128xf32>
    %41 = arith.andi %38, %40 : vector<8x128xi1>
    %42 = arith.extui %41 : vector<8x128xi1> to vector<8x128xi32>
    %43 = arith.sitofp %42 : vector<8x128xi32> to vector<8x128xf32>
    %cst_15 = arith.constant 0.000000e+00 : f32
    %44 = vector.broadcast %cst_15 : f32 to vector<8x128xf32>
    %45 = arith.cmpf oge, %12, %44 : vector<8x128xf32>
    %cst_16 = arith.constant 0.000000e+00 : f32
    %46 = vector.broadcast %cst_16 : f32 to vector<8x128xf32>
    %47 = arith.cmpf olt, %15, %46 : vector<8x128xf32>
    %48 = arith.andi %45, %47 : vector<8x128xi1>
    %49 = arith.extui %48 : vector<8x128xi1> to vector<8x128xi32>
    %50 = arith.sitofp %49 : vector<8x128xi32> to vector<8x128xf32>
    %cst_17 = arith.constant 0.000000e+00 : f32
    %51 = vector.broadcast %cst_17 : f32 to vector<8x128xf32>
    %52 = arith.cmpf oge, %15, %51 : vector<8x128xf32>
    %cst_18 = arith.constant 0.000000e+00 : f32
    %53 = vector.broadcast %cst_18 : f32 to vector<8x128xf32>
    %54 = arith.cmpf olt, %18, %53 : vector<8x128xf32>
    %55 = arith.andi %52, %54 : vector<8x128xi1>
    %56 = arith.extui %55 : vector<8x128xi1> to vector<8x128xi32>
    %57 = arith.sitofp %56 : vector<8x128xi32> to vector<8x128xf32>
    %cst_19 = arith.constant 0.000000e+00 : f32
    %58 = vector.broadcast %cst_19 : f32 to vector<8x128xf32>
    %59 = arith.cmpf oge, %18, %58 : vector<8x128xf32>
    %cst_20 = arith.constant 0.000000e+00 : f32
    %60 = vector.broadcast %cst_20 : f32 to vector<8x128xf32>
    %61 = arith.cmpf olt, %21, %60 : vector<8x128xf32>
    %62 = arith.andi %59, %61 : vector<8x128xi1>
    %63 = arith.extui %62 : vector<8x128xi1> to vector<8x128xi32>
    %64 = arith.sitofp %63 : vector<8x128xi32> to vector<8x128xf32>
    %cst_21 = arith.constant 0.000000e+00 : f32
    %65 = vector.broadcast %cst_21 : f32 to vector<8x128xf32>
    %66 = arith.cmpf oge, %21, %65 : vector<8x128xf32>
    %cst_22 = arith.constant 0.000000e+00 : f32
    %67 = vector.broadcast %cst_22 : f32 to vector<8x128xf32>
    %68 = arith.cmpf olt, %24, %67 : vector<8x128xf32>
    %69 = arith.andi %66, %68 : vector<8x128xi1>
    %70 = arith.extui %69 : vector<8x128xi1> to vector<8x128xi32>
    %71 = arith.sitofp %70 : vector<8x128xi32> to vector<8x128xf32>
    %cst_23 = arith.constant 0.000000e+00 : f32
    %72 = vector.broadcast %cst_23 : f32 to vector<8x128xf32>
    %73 = arith.cmpf oge, %24, %72 : vector<8x128xf32>
    %cst_24 = arith.constant 0.000000e+00 : f32
    %74 = vector.broadcast %cst_24 : f32 to vector<8x128xf32>
    %75 = arith.cmpf olt, %27, %74 : vector<8x128xf32>
    %76 = arith.andi %73, %75 : vector<8x128xi1>
    %77 = arith.extui %76 : vector<8x128xi1> to vector<8x128xi32>
    %78 = arith.sitofp %77 : vector<8x128xi32> to vector<8x128xf32>
    %cst_25 = arith.constant 0.000000e+00 : f32
    %79 = vector.broadcast %cst_25 : f32 to vector<8x128xf32>
    %80 = arith.cmpf oge, %27, %79 : vector<8x128xf32>
    %cst_26 = arith.constant 0.000000e+00 : f32
    %81 = vector.broadcast %cst_26 : f32 to vector<8x128xf32>
    %82 = arith.cmpf olt, %30, %81 : vector<8x128xf32>
    %83 = arith.andi %80, %82 : vector<8x128xi1>
    %84 = arith.extui %83 : vector<8x128xi1> to vector<8x128xi32>
    %85 = arith.sitofp %84 : vector<8x128xi32> to vector<8x128xf32>
    %cst_27 = arith.constant 0.000000e+00 : f32
    %86 = vector.broadcast %cst_27 : f32 to vector<8x128xf32>
    %87 = arith.cmpf oge, %30, %86 : vector<8x128xf32>
    %cst_28 = arith.constant 0.000000e+00 : f32
    %88 = vector.broadcast %cst_28 : f32 to vector<8x128xf32>
    %89 = arith.cmpf olt, %33, %88 : vector<8x128xf32>
    %90 = arith.andi %87, %89 : vector<8x128xi1>
    %91 = arith.extui %90 : vector<8x128xi1> to vector<8x128xi32>
    %92 = arith.sitofp %91 : vector<8x128xi32> to vector<8x128xf32>
    %cst_29 = arith.constant 0.000000e+00 : f32
    %93 = vector.broadcast %cst_29 : f32 to vector<8x128xf32>
    %94 = arith.cmpf oge, %33, %93 : vector<8x128xf32>
    %cst_30 = arith.constant 0.000000e+00 : f32
    %95 = vector.broadcast %cst_30 : f32 to vector<8x128xf32>
    %96 = arith.cmpf olt, %36, %95 : vector<8x128xf32>
    %97 = arith.andi %94, %96 : vector<8x128xi1>
    %98 = arith.extui %97 : vector<8x128xi1> to vector<8x128xi32>
    %99 = arith.sitofp %98 : vector<8x128xi32> to vector<8x128xf32>
    %c0_31 = arith.constant 0 : index
    %c0_32 = arith.constant 0 : index
    %100 = vector.load %arg4[%c0_31, %c0_32] : memref<27x128xf32, #tpu.memory_space<vmem>>, vector<1x128xf32>
    %c1_33 = arith.constant 1 : index
    %c0_34 = arith.constant 0 : index
    %101 = vector.load %arg4[%c1_33, %c0_34] : memref<27x128xf32, #tpu.memory_space<vmem>>, vector<1x128xf32>
    %102 = vector.broadcast %100 : vector<1x128xf32> to vector<8x128xf32>
    %103 = arith.mulf %9, %102 : vector<8x128xf32>
    %104 = arith.mulf %103, %43 : vector<8x128xf32>
    %105 = vector.broadcast %101 : vector<1x128xf32> to vector<8x128xf32>
    %106 = arith.mulf %15, %105 : vector<8x128xf32>
    %107 = arith.mulf %106, %50 : vector<8x128xf32>
    %108 = arith.subf %104, %107 : vector<8x128xf32>
    %c1_35 = arith.constant 1 : index
    %c0_36 = arith.constant 0 : index
    %109 = vector.load %arg4[%c1_35, %c0_36] : memref<27x128xf32, #tpu.memory_space<vmem>>, vector<1x128xf32>
    %c2_37 = arith.constant 2 : index
    %c0_38 = arith.constant 0 : index
    %110 = vector.load %arg4[%c2_37, %c0_38] : memref<27x128xf32, #tpu.memory_space<vmem>>, vector<1x128xf32>
    %111 = vector.broadcast %109 : vector<1x128xf32> to vector<8x128xf32>
    %112 = arith.mulf %12, %111 : vector<8x128xf32>
    %113 = arith.mulf %112, %50 : vector<8x128xf32>
    %114 = vector.broadcast %110 : vector<1x128xf32> to vector<8x128xf32>
    %115 = arith.mulf %18, %114 : vector<8x128xf32>
    %116 = arith.mulf %115, %57 : vector<8x128xf32>
    %117 = arith.subf %113, %116 : vector<8x128xf32>
    %c2_39 = arith.constant 2 : index
    %c0_40 = arith.constant 0 : index
    %118 = vector.load %arg4[%c2_39, %c0_40] : memref<27x128xf32, #tpu.memory_space<vmem>>, vector<1x128xf32>
    %c3_41 = arith.constant 3 : index
    %c0_42 = arith.constant 0 : index
    %119 = vector.load %arg4[%c3_41, %c0_42] : memref<27x128xf32, #tpu.memory_space<vmem>>, vector<1x128xf32>
    %120 = vector.broadcast %118 : vector<1x128xf32> to vector<8x128xf32>
    %121 = arith.mulf %15, %120 : vector<8x128xf32>
    %122 = arith.mulf %121, %57 : vector<8x128xf32>
    %123 = vector.broadcast %119 : vector<1x128xf32> to vector<8x128xf32>
    %124 = arith.mulf %21, %123 : vector<8x128xf32>
    %125 = arith.mulf %124, %64 : vector<8x128xf32>
    %126 = arith.subf %122, %125 : vector<8x128xf32>
    %c3_43 = arith.constant 3 : index
    %c0_44 = arith.constant 0 : index
    %127 = vector.load %arg4[%c3_43, %c0_44] : memref<27x128xf32, #tpu.memory_space<vmem>>, vector<1x128xf32>
    %c4_45 = arith.constant 4 : index
    %c0_46 = arith.constant 0 : index
    %128 = vector.load %arg4[%c4_45, %c0_46] : memref<27x128xf32, #tpu.memory_space<vmem>>, vector<1x128xf32>
    %129 = vector.broadcast %127 : vector<1x128xf32> to vector<8x128xf32>
    %130 = arith.mulf %18, %129 : vector<8x128xf32>
    %131 = arith.mulf %130, %64 : vector<8x128xf32>
    %132 = vector.broadcast %128 : vector<1x128xf32> to vector<8x128xf32>
    %133 = arith.mulf %24, %132 : vector<8x128xf32>
    %134 = arith.mulf %133, %71 : vector<8x128xf32>
    %135 = arith.subf %131, %134 : vector<8x128xf32>
    %c4_47 = arith.constant 4 : index
    %c0_48 = arith.constant 0 : index
    %136 = vector.load %arg4[%c4_47, %c0_48] : memref<27x128xf32, #tpu.memory_space<vmem>>, vector<1x128xf32>
    %c5_49 = arith.constant 5 : index
    %c0_50 = arith.constant 0 : index
    %137 = vector.load %arg4[%c5_49, %c0_50] : memref<27x128xf32, #tpu.memory_space<vmem>>, vector<1x128xf32>
    %138 = vector.broadcast %136 : vector<1x128xf32> to vector<8x128xf32>
    %139 = arith.mulf %21, %138 : vector<8x128xf32>
    %140 = arith.mulf %139, %71 : vector<8x128xf32>
    %141 = vector.broadcast %137 : vector<1x128xf32> to vector<8x128xf32>
    %142 = arith.mulf %27, %141 : vector<8x128xf32>
    %143 = arith.mulf %142, %78 : vector<8x128xf32>
    %144 = arith.subf %140, %143 : vector<8x128xf32>
    %c5_51 = arith.constant 5 : index
    %c0_52 = arith.constant 0 : index
    %145 = vector.load %arg4[%c5_51, %c0_52] : memref<27x128xf32, #tpu.memory_space<vmem>>, vector<1x128xf32>
    %c6_53 = arith.constant 6 : index
    %c0_54 = arith.constant 0 : index
    %146 = vector.load %arg4[%c6_53, %c0_54] : memref<27x128xf32, #tpu.memory_space<vmem>>, vector<1x128xf32>
    %147 = vector.broadcast %145 : vector<1x128xf32> to vector<8x128xf32>
    %148 = arith.mulf %24, %147 : vector<8x128xf32>
    %149 = arith.mulf %148, %78 : vector<8x128xf32>
    %150 = vector.broadcast %146 : vector<1x128xf32> to vector<8x128xf32>
    %151 = arith.mulf %30, %150 : vector<8x128xf32>
    %152 = arith.mulf %151, %85 : vector<8x128xf32>
    %153 = arith.subf %149, %152 : vector<8x128xf32>
    %c6_55 = arith.constant 6 : index
    %c0_56 = arith.constant 0 : index
    %154 = vector.load %arg4[%c6_55, %c0_56] : memref<27x128xf32, #tpu.memory_space<vmem>>, vector<1x128xf32>
    %c7_57 = arith.constant 7 : index
    %c0_58 = arith.constant 0 : index
    %155 = vector.load %arg4[%c7_57, %c0_58] : memref<27x128xf32, #tpu.memory_space<vmem>>, vector<1x128xf32>
    %156 = vector.broadcast %154 : vector<1x128xf32> to vector<8x128xf32>
    %157 = arith.mulf %27, %156 : vector<8x128xf32>
    %158 = arith.mulf %157, %85 : vector<8x128xf32>
    %159 = vector.broadcast %155 : vector<1x128xf32> to vector<8x128xf32>
    %160 = arith.mulf %33, %159 : vector<8x128xf32>
    %161 = arith.mulf %160, %92 : vector<8x128xf32>
    %162 = arith.subf %158, %161 : vector<8x128xf32>
    %c7_59 = arith.constant 7 : index
    %c0_60 = arith.constant 0 : index
    %163 = vector.load %arg4[%c7_59, %c0_60] : memref<27x128xf32, #tpu.memory_space<vmem>>, vector<1x128xf32>
    %c8_61 = arith.constant 8 : index
    %c0_62 = arith.constant 0 : index
    %164 = vector.load %arg4[%c8_61, %c0_62] : memref<27x128xf32, #tpu.memory_space<vmem>>, vector<1x128xf32>
    %165 = vector.broadcast %163 : vector<1x128xf32> to vector<8x128xf32>
    %166 = arith.mulf %30, %165 : vector<8x128xf32>
    %167 = arith.mulf %166, %92 : vector<8x128xf32>
    %168 = vector.broadcast %164 : vector<1x128xf32> to vector<8x128xf32>
    %169 = arith.mulf %36, %168 : vector<8x128xf32>
    %170 = arith.mulf %169, %99 : vector<8x128xf32>
    %171 = arith.subf %167, %170 : vector<8x128xf32>
    %c9_63 = arith.constant 9 : index
    %c0_64 = arith.constant 0 : index
    %172 = vector.load %arg4[%c9_63, %c0_64] : memref<27x128xf32, #tpu.memory_space<vmem>>, vector<1x128xf32>
    %c10 = arith.constant 10 : index
    %c0_65 = arith.constant 0 : index
    %173 = vector.load %arg4[%c10, %c0_65] : memref<27x128xf32, #tpu.memory_space<vmem>>, vector<1x128xf32>
    %174 = vector.broadcast %172 : vector<1x128xf32> to vector<8x128xf32>
    %175 = arith.mulf %9, %174 : vector<8x128xf32>
    %176 = arith.mulf %175, %108 : vector<8x128xf32>
    %177 = vector.broadcast %173 : vector<1x128xf32> to vector<8x128xf32>
    %178 = arith.mulf %18, %177 : vector<8x128xf32>
    %179 = arith.mulf %178, %117 : vector<8x128xf32>
    %180 = arith.subf %176, %179 : vector<8x128xf32>
    %c10_66 = arith.constant 10 : index
    %c0_67 = arith.constant 0 : index
    %181 = vector.load %arg4[%c10_66, %c0_67] : memref<27x128xf32, #tpu.memory_space<vmem>>, vector<1x128xf32>
    %c11 = arith.constant 11 : index
    %c0_68 = arith.constant 0 : index
    %182 = vector.load %arg4[%c11, %c0_68] : memref<27x128xf32, #tpu.memory_space<vmem>>, vector<1x128xf32>
    %183 = vector.broadcast %181 : vector<1x128xf32> to vector<8x128xf32>
    %184 = arith.mulf %12, %183 : vector<8x128xf32>
    %185 = arith.mulf %184, %117 : vector<8x128xf32>
    %186 = vector.broadcast %182 : vector<1x128xf32> to vector<8x128xf32>
    %187 = arith.mulf %21, %186 : vector<8x128xf32>
    %188 = arith.mulf %187, %126 : vector<8x128xf32>
    %189 = arith.subf %185, %188 : vector<8x128xf32>
    %c11_69 = arith.constant 11 : index
    %c0_70 = arith.constant 0 : index
    %190 = vector.load %arg4[%c11_69, %c0_70] : memref<27x128xf32, #tpu.memory_space<vmem>>, vector<1x128xf32>
    %c12 = arith.constant 12 : index
    %c0_71 = arith.constant 0 : index
    %191 = vector.load %arg4[%c12, %c0_71] : memref<27x128xf32, #tpu.memory_space<vmem>>, vector<1x128xf32>
    %192 = vector.broadcast %190 : vector<1x128xf32> to vector<8x128xf32>
    %193 = arith.mulf %15, %192 : vector<8x128xf32>
    %194 = arith.mulf %193, %126 : vector<8x128xf32>
    %195 = vector.broadcast %191 : vector<1x128xf32> to vector<8x128xf32>
    %196 = arith.mulf %24, %195 : vector<8x128xf32>
    %197 = arith.mulf %196, %135 : vector<8x128xf32>
    %198 = arith.subf %194, %197 : vector<8x128xf32>
    %c12_72 = arith.constant 12 : index
    %c0_73 = arith.constant 0 : index
    %199 = vector.load %arg4[%c12_72, %c0_73] : memref<27x128xf32, #tpu.memory_space<vmem>>, vector<1x128xf32>
    %c13 = arith.constant 13 : index
    %c0_74 = arith.constant 0 : index
    %200 = vector.load %arg4[%c13, %c0_74] : memref<27x128xf32, #tpu.memory_space<vmem>>, vector<1x128xf32>
    %201 = vector.broadcast %199 : vector<1x128xf32> to vector<8x128xf32>
    %202 = arith.mulf %18, %201 : vector<8x128xf32>
    %203 = arith.mulf %202, %135 : vector<8x128xf32>
    %204 = vector.broadcast %200 : vector<1x128xf32> to vector<8x128xf32>
    %205 = arith.mulf %27, %204 : vector<8x128xf32>
    %206 = arith.mulf %205, %144 : vector<8x128xf32>
    %207 = arith.subf %203, %206 : vector<8x128xf32>
    %c13_75 = arith.constant 13 : index
    %c0_76 = arith.constant 0 : index
    %208 = vector.load %arg4[%c13_75, %c0_76] : memref<27x128xf32, #tpu.memory_space<vmem>>, vector<1x128xf32>
    %c14 = arith.constant 14 : index
    %c0_77 = arith.constant 0 : index
    %209 = vector.load %arg4[%c14, %c0_77] : memref<27x128xf32, #tpu.memory_space<vmem>>, vector<1x128xf32>
    %210 = vector.broadcast %208 : vector<1x128xf32> to vector<8x128xf32>
    %211 = arith.mulf %21, %210 : vector<8x128xf32>
    %212 = arith.mulf %211, %144 : vector<8x128xf32>
    %213 = vector.broadcast %209 : vector<1x128xf32> to vector<8x128xf32>
    %214 = arith.mulf %30, %213 : vector<8x128xf32>
    %215 = arith.mulf %214, %153 : vector<8x128xf32>
    %216 = arith.subf %212, %215 : vector<8x128xf32>
    %c14_78 = arith.constant 14 : index
    %c0_79 = arith.constant 0 : index
    %217 = vector.load %arg4[%c14_78, %c0_79] : memref<27x128xf32, #tpu.memory_space<vmem>>, vector<1x128xf32>
    %c15 = arith.constant 15 : index
    %c0_80 = arith.constant 0 : index
    %218 = vector.load %arg4[%c15, %c0_80] : memref<27x128xf32, #tpu.memory_space<vmem>>, vector<1x128xf32>
    %219 = vector.broadcast %217 : vector<1x128xf32> to vector<8x128xf32>
    %220 = arith.mulf %24, %219 : vector<8x128xf32>
    %221 = arith.mulf %220, %153 : vector<8x128xf32>
    %222 = vector.broadcast %218 : vector<1x128xf32> to vector<8x128xf32>
    %223 = arith.mulf %33, %222 : vector<8x128xf32>
    %224 = arith.mulf %223, %162 : vector<8x128xf32>
    %225 = arith.subf %221, %224 : vector<8x128xf32>
    %c15_81 = arith.constant 15 : index
    %c0_82 = arith.constant 0 : index
    %226 = vector.load %arg4[%c15_81, %c0_82] : memref<27x128xf32, #tpu.memory_space<vmem>>, vector<1x128xf32>
    %c16 = arith.constant 16 : index
    %c0_83 = arith.constant 0 : index
    %227 = vector.load %arg4[%c16, %c0_83] : memref<27x128xf32, #tpu.memory_space<vmem>>, vector<1x128xf32>
    %228 = vector.broadcast %226 : vector<1x128xf32> to vector<8x128xf32>
    %229 = arith.mulf %27, %228 : vector<8x128xf32>
    %230 = arith.mulf %229, %162 : vector<8x128xf32>
    %231 = vector.broadcast %227 : vector<1x128xf32> to vector<8x128xf32>
    %232 = arith.mulf %36, %231 : vector<8x128xf32>
    %233 = arith.mulf %232, %171 : vector<8x128xf32>
    %234 = arith.subf %230, %233 : vector<8x128xf32>
    %c18 = arith.constant 18 : index
    %c0_84 = arith.constant 0 : index
    %235 = vector.load %arg4[%c18, %c0_84] : memref<27x128xf32, #tpu.memory_space<vmem>>, vector<1x128xf32>
    %c19 = arith.constant 19 : index
    %c0_85 = arith.constant 0 : index
    %236 = vector.load %arg4[%c19, %c0_85] : memref<27x128xf32, #tpu.memory_space<vmem>>, vector<1x128xf32>
    %237 = vector.broadcast %235 : vector<1x128xf32> to vector<8x128xf32>
    %238 = arith.mulf %9, %237 : vector<8x128xf32>
    %239 = arith.mulf %238, %180 : vector<8x128xf32>
    %240 = vector.broadcast %236 : vector<1x128xf32> to vector<8x128xf32>
    %241 = arith.mulf %21, %240 : vector<8x128xf32>
    %242 = arith.mulf %241, %189 : vector<8x128xf32>
    %243 = arith.subf %239, %242 : vector<8x128xf32>
    %c19_86 = arith.constant 19 : index
    %c0_87 = arith.constant 0 : index
    %244 = vector.load %arg4[%c19_86, %c0_87] : memref<27x128xf32, #tpu.memory_space<vmem>>, vector<1x128xf32>
    %c20 = arith.constant 20 : index
    %c0_88 = arith.constant 0 : index
    %245 = vector.load %arg4[%c20, %c0_88] : memref<27x128xf32, #tpu.memory_space<vmem>>, vector<1x128xf32>
    %246 = vector.broadcast %244 : vector<1x128xf32> to vector<8x128xf32>
    %247 = arith.mulf %12, %246 : vector<8x128xf32>
    %248 = arith.mulf %247, %189 : vector<8x128xf32>
    %249 = vector.broadcast %245 : vector<1x128xf32> to vector<8x128xf32>
    %250 = arith.mulf %24, %249 : vector<8x128xf32>
    %251 = arith.mulf %250, %198 : vector<8x128xf32>
    %252 = arith.subf %248, %251 : vector<8x128xf32>
    %c20_89 = arith.constant 20 : index
    %c0_90 = arith.constant 0 : index
    %253 = vector.load %arg4[%c20_89, %c0_90] : memref<27x128xf32, #tpu.memory_space<vmem>>, vector<1x128xf32>
    %c21 = arith.constant 21 : index
    %c0_91 = arith.constant 0 : index
    %254 = vector.load %arg4[%c21, %c0_91] : memref<27x128xf32, #tpu.memory_space<vmem>>, vector<1x128xf32>
    %255 = vector.broadcast %253 : vector<1x128xf32> to vector<8x128xf32>
    %256 = arith.mulf %15, %255 : vector<8x128xf32>
    %257 = arith.mulf %256, %198 : vector<8x128xf32>
    %258 = vector.broadcast %254 : vector<1x128xf32> to vector<8x128xf32>
    %259 = arith.mulf %27, %258 : vector<8x128xf32>
    %260 = arith.mulf %259, %207 : vector<8x128xf32>
    %261 = arith.subf %257, %260 : vector<8x128xf32>
    %c21_92 = arith.constant 21 : index
    %c0_93 = arith.constant 0 : index
    %262 = vector.load %arg4[%c21_92, %c0_93] : memref<27x128xf32, #tpu.memory_space<vmem>>, vector<1x128xf32>
    %c22 = arith.constant 22 : index
    %c0_94 = arith.constant 0 : index
    %263 = vector.load %arg4[%c22, %c0_94] : memref<27x128xf32, #tpu.memory_space<vmem>>, vector<1x128xf32>
    %264 = vector.broadcast %262 : vector<1x128xf32> to vector<8x128xf32>
    %265 = arith.mulf %18, %264 : vector<8x128xf32>
    %266 = arith.mulf %265, %207 : vector<8x128xf32>
    %267 = vector.broadcast %263 : vector<1x128xf32> to vector<8x128xf32>
    %268 = arith.mulf %30, %267 : vector<8x128xf32>
    %269 = arith.mulf %268, %216 : vector<8x128xf32>
    %270 = arith.subf %266, %269 : vector<8x128xf32>
    %c22_95 = arith.constant 22 : index
    %c0_96 = arith.constant 0 : index
    %271 = vector.load %arg4[%c22_95, %c0_96] : memref<27x128xf32, #tpu.memory_space<vmem>>, vector<1x128xf32>
    %c23 = arith.constant 23 : index
    %c0_97 = arith.constant 0 : index
    %272 = vector.load %arg4[%c23, %c0_97] : memref<27x128xf32, #tpu.memory_space<vmem>>, vector<1x128xf32>
    %273 = vector.broadcast %271 : vector<1x128xf32> to vector<8x128xf32>
    %274 = arith.mulf %21, %273 : vector<8x128xf32>
    %275 = arith.mulf %274, %216 : vector<8x128xf32>
    %276 = vector.broadcast %272 : vector<1x128xf32> to vector<8x128xf32>
    %277 = arith.mulf %33, %276 : vector<8x128xf32>
    %278 = arith.mulf %277, %225 : vector<8x128xf32>
    %279 = arith.subf %275, %278 : vector<8x128xf32>
    %c23_98 = arith.constant 23 : index
    %c0_99 = arith.constant 0 : index
    %280 = vector.load %arg4[%c23_98, %c0_99] : memref<27x128xf32, #tpu.memory_space<vmem>>, vector<1x128xf32>
    %c24 = arith.constant 24 : index
    %c0_100 = arith.constant 0 : index
    %281 = vector.load %arg4[%c24, %c0_100] : memref<27x128xf32, #tpu.memory_space<vmem>>, vector<1x128xf32>
    %282 = vector.broadcast %280 : vector<1x128xf32> to vector<8x128xf32>
    %283 = arith.mulf %24, %282 : vector<8x128xf32>
    %284 = arith.mulf %283, %225 : vector<8x128xf32>
    %285 = vector.broadcast %281 : vector<1x128xf32> to vector<8x128xf32>
    %286 = arith.mulf %36, %285 : vector<8x128xf32>
    %287 = arith.mulf %286, %234 : vector<8x128xf32>
    %288 = arith.subf %284, %287 : vector<8x128xf32>
    %289 = tpu.concatenate %6, %243, %252, %261, %270, %279, %288 in 1 : vector<8x128xf32>, vector<8x128xf32>, vector<8x128xf32>, vector<8x128xf32>, vector<8x128xf32>, vector<8x128xf32>, vector<8x128xf32> -> vector<8x896xf32>
    %c0_101 = arith.constant 0 : index
    %c0_102 = arith.constant 0 : index
    %290 = vector.load %arg5[%c0_101, %c0_102] : memref<896x128xf32, #tpu.memory_space<vmem>>, vector<896x128xf32>
    %cst_103 = arith.constant dense<0.000000e+00> : vector<8x128xf32>
    %291 = tpu.matmul %289, %290, %cst_103 {dimension_numbers = #tpu.dot_dimension_numbers<[1], [0], [0], [1], [0, 0, 1, 1], [], []>} : vector<8x896xf32>, vector<896x128xf32>, vector<8x128xf32> -> vector<8x128xf32>
    %c0_104 = arith.constant 0 : index
    %c0_105 = arith.constant 0 : index
    %292 = vector.load %arg6[%c0_104, %c0_105] : memref<8x128xf32, #tpu.memory_space<vmem>>, vector<8x128xf32>
    tpu.vector_store %arg6[%c0_104, %c0_105], %291 {strides = array<i32>} : memref<8x128xf32, #tpu.memory_space<vmem>>, vector<8x128xf32>,
    return
  }
  func.func @transform_0(%arg0: i32, %arg1: i32) -> (i32, i32) {
    %c0_i32 = arith.constant 0 : i32
    %c0_i32_0 = arith.constant 0 : i32
    return %arg0, %c0_i32 : i32, i32
  }
  func.func @transform_1(%arg0: i32, %arg1: i32) -> (i32, i32) {
    %c0_i32 = arith.constant 0 : i32
    %c0_i32_0 = arith.constant 0 : i32
    %c0_i32_1 = arith.constant 0 : i32
    return %c0_i32, %c0_i32_0 : i32, i32
  }
  func.func @transform_2(%arg0: i32, %arg1: i32) -> (i32, i32) {
    %c0_i32 = arith.constant 0 : i32
    %c0_i32_0 = arith.constant 0 : i32
    %c0_i32_1 = arith.constant 0 : i32
    return %c0_i32, %c0_i32_0 : i32, i32
  }
  func.func @transform_3(%arg0: i32, %arg1: i32) -> (i32, i32) {
    %c0_i32 = arith.constant 0 : i32
    %c0_i32_0 = arith.constant 0 : i32
    return %c0_i32, %arg1 : i32, i32
  }
  func.func @transform_4(%arg0: i32, %arg1: i32) -> (i32, i32) {
    %c0_i32 = arith.constant 0 : i32
    return %arg0, %arg1 : i32, i32
  }
}

</mosaic_0001>

<bundles_post_ra>
// kernel: tpu_custom_call.1
= control target key start
LH: loop header
LB: loop body
LE: loop exit
PB: predicated region body
PF: predicated region fallthrough
CT: control target
= control target key end

     0   :  { %9 = vsyncpa [#allocation3], 0  ;;  %s1554_s0 = inlined_call_operand.hbm [shape: f32[8,128], index: 0, kind: input, shape index: {}]   ;;  %s1555_s1 = inlined_call_operand.hbm [shape: f32[10,128], index: 1, kind: input, shape index: {}]   ;;  %s1556_s2 = inlined_call_operand.hbm [shape: f32[27,128], index: 2, kind: input, shape index: {}]   ;;  %s1557_s3 = inlined_call_operand.hbm [shape: f32[896,128], index: 3, kind: input, shape index: {}]   ;;  %s1558_s4 = inlined_call_operand.hbm [shape: f32[8,128], index: 4, kind: output, shape index: {}]  }
   0x1   :  { %10 = vsyncpa [#allocation6], 0 }
   0x2   :  { %11 = vsyncpa [#allocation9], 0 }
   0x3   :  { %12 = vsyncpa [#allocation4], 0  ;;  %s1270_s15 = smov [#allocation5]   ;;  %s1152_s19 = scalar_lea.hbm %s1555_s1, 256 }
   0x4   :  { %s28_s16 = sshll.u32 %s1270_s15, 4  ;;  %p1153_p0 = scmp.ne.s32.totalorder %s1555_s1, %s1152_s19  ;;  %s29_s16 = int_to_ptr.vmem [resolvable:$true] %s28_s16 }
   0x5   :  { %p1156_p1 = scmp.lt.u32.totalorder %s1152_s19, %s1555_s1 }
   0x7   :  { %p1158_p2 = pnand %p1156_p1, %p1153_p0 }
   0x9   :  { %1161 = shalt.err (!%p1158_p2)
}
   0xa   :  { %s1162_s24 = scalar_lea.vmem %s29_s16, 256  ;;  %p1167_p4 = scmp.lt.s32.totalorder %s29_s16, %s29_s16 }
   0xb   :  { %p1163_p3 = scmp.ne.s32.totalorder %s29_s16, %s1162_s24  ;;  %p1168_p5 = scmp.lt.s32.totalorder %s1162_s24, %s1162_s24 }
   0xd   :  { %p1169_p6 = por %p1168_p5, %p1167_p4 }
   0xf   :  { %p1170_p7 = pnand %p1169_p6, %p1163_p3 }
  0x11   :  { %1173 = shalt.err (!%p1170_p7)
}
  0x12   :  { %s1271_s25 = smov 128   ;;  %s1272_s26 = smov 8  }
  0x13   :  { %34 = dma.hbm_to_vmem [thread:$0]  %s1555_s1, 256, %s29_s16, [#allocation6], %s1271_s25, %s1271_s25, %s1272_s26  }
  0x14   :  { %s1273_s29 = smov [#allocation2]   ;;  %s1274_s5 = smov [#allocation7]  }
  0x15   :  { %s19_s30 = sshll.u32 %s1273_s29, 4  ;;  %s40_s6 = sshll.u32 %s1274_s5, 4  ;;  %s20_s30 = int_to_ptr.vmem [resolvable:$true] %s19_s30  ;;  %s41_s6 = int_to_ptr.vmem [resolvable:$true] %s40_s6 }
  0x16   :  { %s1174_s9 = scalar_lea.hbm %s1554_s0, 128 }
  0x17   :  { %p1175_p8 = scmp.ne.s32.totalorder %s1554_s0, %s1174_s9  ;;  %p1178_p9 = scmp.lt.u32.totalorder %s1174_s9, %s1554_s0 }
  0x19   :  { %p1180_p10 = pnand %p1178_p9, %p1175_p8 }
  0x1b   :  { %1183 = shalt.err (!%p1180_p10)
}
  0x1c   :  { %s1184_s1 = scalar_lea.vmem %s20_s30, 128  ;;  %p1189_p12 = scmp.lt.s32.totalorder %s20_s30, %s20_s30 }
  0x1d   :  { %p1185_p11 = scmp.ne.s32.totalorder %s20_s30, %s1184_s1  ;;  %p1190_p13 = scmp.lt.s32.totalorder %s1184_s1, %s1184_s1 }
  0x1f   :  { %p1191_p0 = por %p1190_p13, %p1189_p12 }
  0x21   :  { %p1192_p1 = pnand %p1191_p0, %p1185_p11 }
  0x23   :  { %1195 = shalt.err (!%p1192_p1)
}
  0x24   :  { %22 = dma.hbm_to_vmem [thread:$0]  %s1554_s0, 128, %s20_s30, [#allocation3]  }
  0x25   :  { %s1196_s18 = scalar_lea.hbm %s1556_s2, 512 }
  0x26   :  { %p1197_p2 = scmp.ne.s32.totalorder %s1556_s2, %s1196_s18  ;;  %p1200_p3 = scmp.lt.u32.totalorder %s1196_s18, %s1556_s2 }
  0x28   :  { %p1202_p4 = pnand %p1200_p3, %p1197_p2 }
  0x2a   :  { %1205 = shalt.err (!%p1202_p4)
}
  0x2b   :  { %s1206_s23 = scalar_lea.vmem %s41_s6, 512  ;;  %p1211_p6 = scmp.lt.s32.totalorder %s41_s6, %s41_s6 }
  0x2c   :  { %p1207_p5 = scmp.ne.s32.totalorder %s41_s6, %s1206_s23  ;;  %p1212_p7 = scmp.lt.s32.totalorder %s1206_s23, %s1206_s23 }
  0x2e   :  { %p1213_p8 = por %p1212_p7, %p1211_p6 }
  0x30   :  { %p1214_p9 = pnand %p1213_p8, %p1207_p5 }
  0x32   :  { %1217 = shalt.err (!%p1214_p9)
}
  0x33   :  { %46 = dma.hbm_to_vmem [thread:$0]  %s1556_s2, 512, %s41_s6, [#allocation6], %s1271_s25, %s1271_s25, %s1272_s26  }
  0x34   :  { %s1275_s27 = smov [#allocation8]   ;;  %s1218_s5 = scalar_lea.hbm %s1557_s3, 14336 }
  0x35   :  { %s52_s28 = sshll.u32 %s1275_s27, 4  ;;  %p1219_p10 = scmp.ne.s32.totalorder %s1557_s3, %s1218_s5  ;;  %s53_s28 = int_to_ptr.vmem [resolvable:$true] %s52_s28 }
  0x36   :  { %p1222_p11 = scmp.lt.u32.totalorder %s1218_s5, %s1557_s3 }
  0x38   :  { %p1224_p12 = pnand %p1222_p11, %p1219_p10 }
  0x3a   :  { %1227 = shalt.err (!%p1224_p12)
}
  0x3b   :  { %s1228_s11 = scalar_lea.vmem %s53_s28, 14336  ;;  %p1233_p0 = scmp.lt.s32.totalorder %s53_s28, %s53_s28 }
  0x3c   :  { %p1229_p13 = scmp.ne.s32.totalorder %s53_s28, %s1228_s11  ;;  %p1234_p1 = scmp.lt.s32.totalorder %s1228_s11, %s1228_s11 }
  0x3e   :  { %p1235_p2 = por %p1234_p1, %p1233_p0 }
  0x40   :  { %p1236_p3 = pnand %p1235_p2, %p1229_p13 }
  0x42   :  { %1239 = shalt.err (!%p1236_p3)
}
  0x43   :  { %58 = dma.hbm_to_vmem [thread:$0]  %s1557_s3, 14336, %s53_s28, [#allocation9], %s1271_s25, %s1271_s25, %s1272_s26  }
  0x44   :  { %1262 = dma.done.wait [#allocation3], 128  }
  0x45   :  { %1263 = vsyncadd [#allocation3], 4294967168 }
  0x46   :  { %1264 = dma.done.wait [#allocation6], 768  }
  0x47   :  { %1265 = vsyncadd [#allocation6], 4294966528 }
  0x48   :  { %1266 = dma.done.wait [#allocation9], 14336  }
  0x49   :  { %1267 = vsyncadd [#allocation9], 4294952960  ;;  %v424_v0 = vld [vmem:[#allocation8 + $0x80] sm:$0xff]  ;;  %v425_v1 = vld [vmem:[#allocation8 + $0x88] sm:$0xff]  ;;  %s1279_s3 = smov [#allocation10]  }
  0x4a   :  { %v456_v2 = vld [vmem:[#allocation8 + $0x180] sm:$0xff]  ;;  %v1018_v3 = vpack.c.bf16 %v425_v1, %v424_v0  ;;  %v457_v4 = vld [vmem:[#allocation8 + $0x188] sm:$0xff]  ;;  %v426_v11 = vld [vmem:[#allocation8 + $0x90] sm:$0xff]  ;;  %s807_s25 = sshll.u32 %s1279_s3, 4  ;;  %s808_s25 = int_to_ptr.vmem [resolvable:$true] %s807_s25 }
  0x4b   :  { %v408_v5 = vld [vmem:[#allocation8] sm:$0xff]  ;;  %v409_v6 = vld [vmem:[#allocation8 + $0x8] sm:$0xff]  ;;  %v1050_v7 = vpack.c.bf16 %v457_v4, %v456_v2  ;;  %v427_v13 = vld [vmem:[#allocation8 + $0x98] sm:$0xff]  ;;  %s1240_s26 = scalar_lea.vmem %s808_s25, 128  ;;  %p1245_p5 = scmp.lt.s32.totalorder %s808_s25, %s808_s25 }
  0x4c   :  { %v1020_v8 = vpack.c.bf16 %v409_v6, %v408_v5  ;;  %v440_v9 = vld [vmem:[#allocation8 + $0x100] sm:$0xff]  ;;  %v441_v10 = vld [vmem:[#allocation8 + $0x108] sm:$0xff]  ;;  %1019 = vmatprep.subr.bf16.mxu0 %v1018_v3  ;;  %v458_v14 = vld [vmem:[#allocation8 + $0x190] sm:$0xff]  ;;  %v1022_v16 = vpack.c.bf16 %v427_v13, %v426_v11  ;;  %p1241_p4 = scmp.ne.s32.totalorder %s808_s25, %s1240_s26  ;;  %p1246_p6 = scmp.lt.s32.totalorder %s1240_s26, %s1240_s26 }
  0x4d   :  { %v1052_v12 = vpack.c.bf16 %v441_v10, %v440_v9  ;;  %v459_v15 = vld [vmem:[#allocation8 + $0x198] sm:$0xff]  ;;  %1051 = vmatprep.subr.bf16.mxu1 %v1050_v7  ;;  %v410_v18 = vld [vmem:[#allocation8 + $0x10] sm:$0xff]  ;;  %v428_v23 = vld [vmem:[#allocation8 + $0xa0] sm:$0xff] }
  0x4e   :  { %1021 = vmatpush3.bf16.msra.mxu0 %v1020_v8  ;;  %v1054_v17 = vpack.c.bf16 %v459_v15, %v458_v14  ;;  %v411_v19 = vld [vmem:[#allocation8 + $0x18] sm:$0xff]  ;;  %v442_v20 = vld [vmem:[#allocation8 + $0x110] sm:$0xff]  ;;  %v429_v24 = vld [vmem:[#allocation8 + $0xa8] sm:$0xff]  ;;  %p1247_p7 = por %p1246_p6, %p1245_p5 }
  0x4f   :  { %1053 = vmatpush3.bf16.msra.mxu1 %v1052_v12  ;;  %v1024_v21 = vpack.c.bf16 %v411_v19, %v410_v18  ;;  %v443_v22 = vld [vmem:[#allocation8 + $0x118] sm:$0xff]  ;;  %1023 = vmatprep.subr.bf16.mxu0 %v1022_v16  ;;  %v1026_v26 = vpack.c.bf16 %v429_v24, %v428_v23  ;;  %v460_v27 = vld [vmem:[#allocation8 + $0x1a0] sm:$0xff]  ;;  %v461_v28 = vld [vmem:[#allocation8 + $0x1a8] sm:$0xff] }
  0x50   :  { %1055 = vmatprep.subr.bf16.mxu1 %v1054_v17  ;;  %v1056_v25 = vpack.c.bf16 %v443_v22, %v442_v20  ;;  %v412_v29 = vld [vmem:[#allocation8 + $0x20] sm:$0xff]  ;;  %v1058_v30 = vpack.c.bf16 %v461_v28, %v460_v27  ;;  %v413_v31 = vld [vmem:[#allocation8 + $0x28] sm:$0xff]  ;;  %v430_v35 = vld [vmem:[#allocation8 + $0xb0] sm:$0xff]  ;;  %p1248_p8 = pnand %p1247_p7, %p1241_p4 }
  0x51   :  { %v444_v32 = vld [vmem:[#allocation8 + $0x120] sm:$0xff]  ;;  %v445_v33 = vld [vmem:[#allocation8 + $0x128] sm:$0xff]  ;;  %v1028_v34 = vpack.c.bf16 %v413_v31, %v412_v29  ;;  %v431_v36 = vld [vmem:[#allocation8 + $0xb8] sm:$0xff] }
  0x52   :  { %1025 = vmatpush3.bf16.msra.mxu0 %v1024_v21  ;;  %v462_v37 = vld [vmem:[#allocation8 + $0x1b0] sm:$0xff]  ;;  %v1060_v38 = vpack.c.bf16 %v445_v33, %v444_v32  ;;  %v1030_v39 = vpack.c.bf16 %v431_v36, %v430_v35  ;;  %v463_v40 = vld [vmem:[#allocation8 + $0x1b8] sm:$0xff]  ;;  %v432_v46 = vld [vmem:[#allocation8 + $0xc0] sm:$0xff] }
  0x53   :  { %1057 = vmatpush3.bf16.msra.mxu1 %v1056_v25  ;;  %1027 = vmatprep.subr.bf16.mxu0 %v1026_v26  ;;  %v414_v41 = vld [vmem:[#allocation8 + $0x30] sm:$0xff]  ;;  %v415_v42 = vld [vmem:[#allocation8 + $0x38] sm:$0xff]  ;;  %v1062_v43 = vpack.c.bf16 %v463_v40, %v462_v37  ;;  %v433_v47 = vld [vmem:[#allocation8 + $0xc8] sm:$0xff] }
  0x54   :  { %1059 = vmatprep.subr.bf16.mxu1 %v1058_v30  ;;  %v446_v44 = vld [vmem:[#allocation8 + $0x130] sm:$0xff]  ;;  %v447_v45 = vld [vmem:[#allocation8 + $0x138] sm:$0xff]  ;;  %v464_v48 = vld [vmem:[#allocation8 + $0x1c0] sm:$0xff]  ;;  %v1032_v50 = vpack.c.bf16 %v415_v42, %v414_v41  ;;  %v1034_v54 = vpack.c.bf16 %v433_v47, %v432_v46 }
  0x55   :  { %v465_v49 = vld [vmem:[#allocation8 + $0x1c8] sm:$0xff]  ;;  %v416_v51 = vld [vmem:[#allocation8 + $0x40] sm:$0xff]  ;;  %v1064_v53 = vpack.c.bf16 %v447_v45, %v446_v44  ;;  %v434_v57 = vld [vmem:[#allocation8 + $0xd0] sm:$0xff] }
  0x56   :  { %1029 = vmatpush3.bf16.msra.mxu0 %v1028_v34  ;;  %v417_v52 = vld [vmem:[#allocation8 + $0x48] sm:$0xff]  ;;  %v448_v55 = vld [vmem:[#allocation8 + $0x140] sm:$0xff]  ;;  %v1066_v58 = vpack.c.bf16 %v465_v49, %v464_v48  ;;  %v435_v59 = vld [vmem:[#allocation8 + $0xd8] sm:$0xff] }
  0x57   :  { %1061 = vmatpush3.bf16.msra.mxu1 %v1060_v38  ;;  %1031 = vmatprep.subr.bf16.mxu0 %v1030_v39  ;;  %v449_v56 = vld [vmem:[#allocation8 + $0x148] sm:$0xff]  ;;  %v466_v60 = vld [vmem:[#allocation8 + $0x1d0] sm:$0xff]  ;;  %v467_v61 = vld [vmem:[#allocation8 + $0x1d8] sm:$0xff]  ;;  %v1036_v2 = vpack.c.bf16 %v417_v52, %v416_v51  ;;  %v1038_v7 = vpack.c.bf16 %v435_v59, %v434_v57  ;;  %v1276_v51 = vmov 0.0  }
  0x58   :  { %1063 = vmatprep.subr.bf16.mxu1 %v1062_v43  ;;  %v418_v62 = vld [vmem:[#allocation8 + $0x50] sm:$0xff]  ;;  %v419_v63 = vld [vmem:[#allocation8 + $0x58] sm:$0xff]  ;;  %v436_v3 = vld [vmem:[#allocation8 + $0xe0] sm:$0xff]  ;;  %v1068_v6 = vpack.c.bf16 %v449_v56, %v448_v55  ;;  %v1070_v11 = vpack.c.bf16 %v467_v61, %v466_v60 }
  0x59   :  { %v450_v0 = vld [vmem:[#allocation8 + $0x150] sm:$0xff]  ;;  %v451_v1 = vld [vmem:[#allocation8 + $0x158] sm:$0xff]  ;;  %v437_v4 = vld [vmem:[#allocation8 + $0xe8] sm:$0xff]  ;;  %v1040_v18 = vpack.c.bf16 %v419_v63, %v418_v62 }
  0x5a   :  { %1033 = vmatpush3.bf16.msra.mxu0 %v1032_v50  ;;  %v468_v5 = vld [vmem:[#allocation8 + $0x1e0] sm:$0xff]  ;;  %v469_v8 = vld [vmem:[#allocation8 + $0x1e8] sm:$0xff]  ;;  %v1370_v14 = vld [vmem:[#allocation8 + $0xf0] sm:$0xff]  ;;  %v1072_v19 = vpack.c.bf16 %v451_v1, %v450_v0  ;;  %v1042_v23 = vpack.c.bf16 %v437_v4, %v436_v3 }
  0x5b   :  { %1065 = vmatpush3.bf16.msra.mxu1 %v1064_v53  ;;  %1035 = vmatprep.subr.bf16.mxu0 %v1034_v54  ;;  %v1362_v9 = vld [vmem:[#allocation8 + $0x60] sm:$0xff]  ;;  %v1364_v10 = vld [vmem:[#allocation8 + $0x68] sm:$0xff]  ;;  %v1372_v15 = vld [vmem:[#allocation8 + $0xf8] sm:$0xff]  ;;  %v1074_v24 = vpack.c.bf16 %v469_v8, %v468_v5 }
  0x5c   :  { %1067 = vmatprep.subr.bf16.mxu1 %v1066_v58  ;;  %v1366_v12 = vld [vmem:[#allocation8 + $0x160] sm:$0xff]  ;;  %v1368_v13 = vld [vmem:[#allocation8 + $0x168] sm:$0xff]  ;;  %v1374_v16 = vld [vmem:[#allocation8 + $0x1f0] sm:$0xff]  ;;  %v1044_v25 = vpack.c.bf16 %v1364_v10, %v1362_v9  ;;  %v1046_v30 = vpack.c.bf16 %v1372_v15, %v1370_v14 }
  0x5d   :  { %v1376_v17 = vld [vmem:[#allocation8 + $0x1f8] sm:$0xff]  ;;  %v1378_v20 = vld [vmem:[#allocation8 + $0x70] sm:$0xff]  ;;  %v1388_v27 = vld [vmem:[#allocation2] sm:$0xff]  ;;  %v1076_v29 = vpack.c.bf16 %v1368_v13, %v1366_v12 }
  0x5e   :  { %1037 = vmatpush3.bf16.msra.mxu0 %v1036_v2  ;;  %v1380_v21 = vld [vmem:[#allocation8 + $0x78] sm:$0xff]  ;;  %v1382_v22 = vld [vmem:[#allocation8 + $0x170] sm:$0xff]  ;;  %v1078_v31 = vpack.c.bf16 %v1376_v17, %v1374_v16  ;;  %v837_v41 = vld [vmem:[#allocation7] ss:$0 sm:$0xff] }
  0x5f   :  { %1069 = vmatpush3.bf16.msra.mxu1 %v1068_v6  ;;  %1039 = vmatprep.subr.bf16.mxu0 %v1038_v7  ;;  %v1386_v26 = vld [vmem:[#allocation8 + $0x178] sm:$0xff]  ;;  %v818_v28 = vld [vmem:[#allocation5] ss:$0 sm:$0xff]  ;;  %v819_v33 = vld [vmem:[#allocation5 + $0x1] ss:$0 sm:$0xff]  ;;  %v1048_v36 = vpack.c.bf16 %v1380_v21, %v1378_v20 }
  0x60   :  { %1071 = vmatprep.subr.bf16.mxu1 %v1070_v11  ;;  %v1397_v32 = vsub.f32 %v1388_v27, %v818_v28  ;;  %v820_v34 = vld [vmem:[#allocation5 + $0x2] ss:$0 sm:$0xff]  ;;  %v821_v35 = vld [vmem:[#allocation5 + $0x3] ss:$0 sm:$0xff]  ;;  %v1402_v37 = vsub.f32 %v1388_v27, %v819_v33  ;;  %v822_v40 = vld [vmem:[#allocation5 + $0x4] ss:$0 sm:$0xff]  ;;  %v1080_v43 = vpack.c.bf16 %v1386_v26, %v1382_v22 }
  0x61   :  { %v1405_v38 = vsub.f32 %v1388_v27, %v820_v34  ;;  %v1408_v39 = vsub.f32 %v1388_v27, %v821_v35  ;;  %v838_v42 = vld [vmem:[#allocation7 + $0x1] ss:$0 sm:$0xff]  ;;  %v1413_v44 = vsub.f32 %v1388_v27, %v822_v40  ;;  %v839_v46 = vld [vmem:[#allocation7 + $0x2] ss:$0 sm:$0xff]  ;;  %v1417_v47 = vld [vmem:[#allocation7 + $0x3] ss:$0 sm:$0xff] }
  0x62   :  { %1041 = vmatpush3.bf16.msra.mxu0 %v1040_v18  ;;  %vm138_vm0 = vcmp.ge.f32.partialorder %v1397_v32, 0.0  ;;  %v189_v45 = vmul.f32 %v837_v41, %v1397_v32  ;;  %vm139_vm1 = vcmp.lt.f32.partialorder %v1402_v37, 0.0  ;;  %vm143_vm2 = vcmp.ge.f32.partialorder %v1402_v37, 0.0  ;;  %v846_v48 = vld [vmem:[#allocation7 + $0x9] ss:$0 sm:$0xff] }
  0x63   :  { %1073 = vmatpush3.bf16.msra.mxu1 %v1072_v19  ;;  %1043 = vmatprep.subr.bf16.mxu0 %v1042_v23  ;;  %vm144_vm3 = vcmp.lt.f32.partialorder %v1405_v38, 0.0  ;;  %vm148_vm4 = vcmp.ge.f32.partialorder %v1405_v38, 0.0  ;;  %vm140_vm5 = vmand %vm138_vm0, %vm139_vm1  ;;  %vm149_vm6 = vcmp.lt.f32.partialorder %v1408_v39, 0.0  ;;  %vm153_vm7 = vcmp.ge.f32.partialorder %v1408_v39, 0.0  ;;  %v847_v50 = vld [vmem:[#allocation7 + $0xa] ss:$0 sm:$0xff] }
  0x64   :  { %1075 = vmatprep.subr.bf16.mxu1 %v1074_v24  ;;  %vm154_vm8 = vcmp.lt.f32.partialorder %v1413_v44, 0.0  ;;  %v195_v49 = vmul.f32 %v838_v42, %v1405_v38  ;;  %v828_v52 = vsel %vm140_vm5, 1.0, %v1276_v51  ;;  %vm145_vm9 = vmand %vm143_vm2, %vm144_vm3  ;;  %v199_v53 = vmul.f32 %v838_v42, %v1402_v37  ;;  %v848_v60 = vld [vmem:[#allocation7 + $0xb] ss:$0 sm:$0xff]  ;;  %v854_v61 = vld [vmem:[#allocation7 + $0x12] ss:$0 sm:$0xff] }
  0x65   :  { %v205_v54 = vmul.f32 %v839_v46, %v1408_v39  ;;  %v209_v55 = vmul.f32 %v839_v46, %v1405_v38  ;;  %v829_v56 = vsel %vm145_vm9, 1.0, %v1276_v51  ;;  %vm150_vm10 = vmand %vm148_vm4, %vm149_vm6  ;;  %v190_v57 = vmul.f32 %v828_v52, %v189_v45  ;;  %v855_v2 = vld [vmem:[#allocation7 + $0x13] ss:$0 sm:$0xff]  ;;  %v823_v3 = vld [vmem:[#allocation5 + $0x5] ss:$0 sm:$0xff] }
  0x66   :  { %1045 = vmatpush3.bf16.msra.mxu0 %v1044_v25  ;;  %v215_v58 = vmul.f32 %v1417_v47, %v1413_v44  ;;  %v274_v59 = vmul.f32 %v846_v48, %v1397_v32  ;;  %v830_v62 = vsel %vm150_vm10, 1.0, %v1276_v51  ;;  %vm155_vm11 = vmand %vm153_vm7, %vm154_vm8  ;;  %v196_v63 = vmul.f32 %v829_v56, %v195_v49  ;;  %v824_v8 = vld [vmem:[#allocation5 + $0x6] ss:$0 sm:$0xff]  ;;  %v841_v16 = vld [vmem:[#allocation7 + $0x4] ss:$0 sm:$0xff] }
  0x67   :  { %1077 = vmatpush3.bf16.msra.mxu1 %v1076_v29  ;;  %1047 = vmatprep.subr.bf16.mxu0 %v1046_v30  ;;  %v200_v0 = vmul.f32 %v829_v56, %v199_v53  ;;  %v280_v1 = vmul.f32 %v847_v50, %v1408_v39  ;;  %v831_v4 = vsel %vm155_vm11, 1.0, %v1276_v51  ;;  %v206_v5 = vmul.f32 %v830_v62, %v205_v54  ;;  %v1455_v20 = vld [vmem:[#allocation7 + $0x5] ss:$0 sm:$0xff]  ;;  %v1471_v40 = vld [vmem:[#allocation7 + $0xd] ss:$0 sm:$0xff] }
  0x68   :  { %1079 = vmatprep.subr.bf16.mxu1 %v1078_v31  ;;  %v210_v6 = vmul.f32 %v830_v62, %v209_v55  ;;  %v284_v7 = vmul.f32 %v847_v50, %v1402_v37  ;;  %v197_v9 = vsub.f32 %v190_v57, %v196_v63  ;;  %v216_v10 = vmul.f32 %v831_v4, %v215_v58  ;;  %v856_v50 = vld [vmem:[#allocation7 + $0x14] ss:$0 sm:$0xff]  ;;  %v1483_v56 = vld [vmem:[#allocation7 + $0x15] ss:$0 sm:$0xff]  ;;  %v489_v62 = vld [vmem:[#allocation8 + $0x288] sm:$0xff] }
  0x69   :  { %v290_v11 = vmul.f32 %v848_v60, %v1413_v44  ;;  %v207_v12 = vsub.f32 %v200_v0, %v206_v5  ;;  %v349_v13 = vmul.f32 %v854_v61, %v1397_v32  ;;  %v355_v14 = vmul.f32 %v855_v2, %v1413_v44  ;;  %v849_v32 = vld [vmem:[#allocation7 + $0xc] ss:$0 sm:$0xff]  ;;  %v488_v61 = vld [vmem:[#allocation8 + $0x280] sm:$0xff] }
  0x6a   :  { %1049 = vmatpush3.bf16.msra.mxu0 %v1048_v36  ;;  %v1449_v15 = vsub.f32 %v1388_v27, %v823_v3  ;;  %v217_v17 = vsub.f32 %v210_v6, %v216_v10  ;;  %v275_v18 = vmul.f32 %v274_v59, %v197_v9  ;;  %v1452_v19 = vsub.f32 %v1388_v27, %v824_v8  ;;  %v504_v9 = vld [vmem:[#allocation8 + $0x300] sm:$0xff]  ;;  %v505_v10 = vld [vmem:[#allocation8 + $0x308] sm:$0xff] }
  0x6b   :  { %1081 = vmatpush3.bf16.msra.mxu1 %v1080_v43  ;;  %vm158_vm12 = vcmp.ge.f32.partialorder %v1413_v44, 0.0  ;;  %v281_v21 = vmul.f32 %v280_v1, %v207_v12  ;;  %v285_v22 = vmul.f32 %v284_v7, %v207_v12  ;;  %v1277_v23 = vmov 0.0|0.0  }
  0x6c   :  { %vm159_vm13 = vcmp.lt.f32.partialorder %v1449_v15, 0.0  ;;  %vm163_vm14 = vcmp.ge.f32.partialorder %v1449_v15, 0.0  ;;  %1114 = vmatprep.subr.bf16.mxu1 %v1277_v23  ;;  %v291_v24 = vmul.f32 %v290_v11, %v217_v17  ;;  %vm164_vm0 = vcmp.lt.f32.partialorder %v1452_v19, 0.0 }
  0x6d   :  { %vm160_vm15 = vmand %vm158_vm12, %vm159_vm13  ;;  %v219_v25 = vmul.f32 %v1417_v47, %v1408_v39  ;;  %v225_v26 = vmul.f32 %v841_v16, %v1449_v15  ;;  %v282_v28 = vsub.f32 %v275_v18, %v281_v21  ;;  %v229_v30 = vmul.f32 %v841_v16, %v1413_v44  ;;  %v507_v16 = vld [vmem:[#allocation8 + $0x318] sm:$0xff]  ;;  %v843_v21 = vld [vmem:[#allocation7 + $0x6] ss:$0 sm:$0xff] }
  0x6e   :  { %v832_v29 = vsel %vm160_vm15, 1.0, %v1276_v51  ;;  %vm165_vm1 = vmand %vm163_vm14, %vm164_vm0  ;;  %v235_v31 = vmul.f32 %v1455_v20, %v1452_v19  ;;  %v292_v33 = vsub.f32 %v285_v22, %v291_v24  ;;  %v72_v45 = vsub.f32 0.0, %v1388_v27  ;;  %v826_v18 = vld [vmem:[#allocation5 + $0x8] ss:$0 sm:$0xff] }
  0x6f   :  { %v1469_v34 = vsel %vm165_vm1, 1.0, %v1276_v51  ;;  %v220_v35 = vmul.f32 %v831_v4, %v219_v25  ;;  %v226_v36 = vmul.f32 %v832_v29, %v225_v26  ;;  %v350_v41 = vmul.f32 %v349_v13, %v282_v28  ;;  %v844_v28 = vld [vmem:[#allocation7 + $0x7] ss:$0 sm:$0xff] }
  0x70   :  { %v230_v42 = vmul.f32 %v832_v29, %v229_v30  ;;  %v236_v43 = vmul.f32 %v1469_v34, %v235_v31  ;;  %v356_v46 = vmul.f32 %v355_v14, %v292_v33  ;;  %v294_v48 = vmul.f32 %v848_v60, %v1405_v38  ;;  %v506_v14 = vld [vmem:[#allocation8 + $0x310] sm:$0xff]  ;;  %v508_v29 = vld [vmem:[#allocation8 + $0x320] sm:$0xff]  ;;  %v509_v30 = vld [vmem:[#allocation8 + $0x328] sm:$0xff] }
  0x71   :  { %v227_v47 = vsub.f32 %v220_v35, %v226_v36  ;;  %v300_v49 = vmul.f32 %v849_v32, %v1449_v15  ;;  %v359_v52 = vmul.f32 %v855_v2, %v1402_v37  ;;  %v304_v54 = vmul.f32 %v849_v32, %v1408_v39  ;;  %v851_v31 = vld [vmem:[#allocation7 + $0xe] ss:$0 sm:$0xff] }
  0x72   :  { %v1478_v53 = vsub.f32 %v230_v42, %v236_v43  ;;  %v310_v55 = vmul.f32 %v1471_v40, %v1452_v19  ;;  %v357_v57 = vsub.f32 %v350_v41, %v356_v46  ;;  %v295_v58 = vmul.f32 %v294_v48, %v217_v17  ;;  %v825_v17 = vld [vmem:[#allocation5 + $0x7] ss:$0 sm:$0xff]  ;;  %v852_v42 = vld [vmem:[#allocation7 + $0xf] ss:$0 sm:$0xff]  ;;  %v827_v48 = vld [vmem:[#allocation5 + $0x9] ss:$0 sm:$0xff] }
  0x73   :  { %v301_v59 = vmul.f32 %v300_v49, %v227_v47  ;;  %v305_v60 = vmul.f32 %v304_v54, %v227_v47  ;;  %v365_v0 = vmul.f32 %v856_v50, %v1449_v15  ;;  %v369_v37 = vmul.f32 %v856_v50, %v1405_v38  ;;  %v511_v49 = vld [vmem:[#allocation8 + $0x338] sm:$0xff] }
  0x74   :  { %v311_v63 = vmul.f32 %v310_v55, %v1478_v53  ;;  %584 = vmatprep.mubr.f32.mxu0 %v357_v57  ;;  %v375_v2 = vmul.f32 %v1483_v56, %v1452_v19  ;;  %v73_v3 = vmul.f32 1.442695, %v72_v45  ;;  %v360_v5 = vmul.f32 %v359_v52, %v292_v33 }
  0x75   :  { %v302_v1 = vsub.f32 %v295_v58, %v301_v59  ;;  %v1082_v6 = vpack.c.bf16 %v489_v62, %v488_v61  ;;  %v1115_v13 = vpack.c.bf16 %v505_v10, %v504_v9  ;;  %v239_v22 = vmul.f32 %v1455_v20, %v1449_v15  ;;  %v845_v59 = vld [vmem:[#allocation7 + $0x8] ss:$0 sm:$0xff] }
  0x76   :  { %v1490_v4 = vsub.f32 %v305_v60, %v311_v63  ;;  %1148 = vpow2.f32 %v73_v3  ;;  %v1118_v24 = vpack.c.bf16 %v507_v16, %v506_v14  ;;  %v1496_v25 = vsub.f32 %v1388_v27, %v825_v17  ;;  %v1518_v60 = vld [vmem:[#allocation7 + $0x16] ss:$0 sm:$0xff]  ;;  %v859_v63 = vld [vmem:[#allocation7 + $0x17] ss:$0 sm:$0xff]  ;;  %v513_v3 = vld [vmem:[#allocation8 + $0x348] sm:$0xff] }
  0x77   :  { %v370_v7 = vmul.f32 %v369_v37, %v302_v1  ;;  %v366_v8 = vmul.f32 %v365_v0, %v302_v1  ;;  %1083 = vmatprep.subr.bf16.mxu0 %v1082_v6  ;;  %v131_v26 = vsub.f32 %v1388_v27, %v826_v18  ;;  %vm168_vm2 = vcmp.ge.f32.partialorder %v1452_v19, 0.0  ;;  %v472_v14 = vld [vmem:[#allocation8 + $0x200] sm:$0xff] }
  0x78   :  { %v376_v11 = vmul.f32 %v375_v2, %v1490_v4  ;;  %vm1278_vm3 = vmmov 0   ;;  %v249_v20 = vmul.f32 %v843_v21, %v1452_v19  ;;  %vm169_vm4 = vcmp.lt.f32.partialorder %v1496_v25, 0.0  ;;  %v512_v2 = vld [vmem:[#allocation8 + $0x340] sm:$0xff] }
  0x79   :  { %v367_v12 = vsub.f32 %v360_v5, %v366_v8  ;;  %vm173_vm5 = vcmp.ge.f32.partialorder %v1496_v25, 0.0  ;;  %vm174_vm6 = vcmp.lt.f32.partialorder %v131_v26, 0.0  ;;  %v245_v32 = vmul.f32 %v843_v21, %v1496_v25  ;;  %vm170_vm7 = vmand %vm168_vm2, %vm169_vm4  ;;  %v853_v8 = vld [vmem:[#allocation7 + $0x10] ss:$0 sm:$0xff] }
  0x7a   :  { %v377_v38 = vsub.f32 %v370_v7, %v376_v11  ;;  %v240_v35 = vmul.f32 %v1469_v34, %v239_v22  ;;  %v314_v36 = vmul.f32 %v1471_v40, %v1413_v44  ;;  %v255_v41 = vmul.f32 %v844_v28, %v131_v26  ;;  %vm175_vm8 = vmand %vm173_vm5, %vm174_vm6  ;;  %v510_v34 = vld [vmem:[#allocation8 + $0x330] sm:$0xff]  ;;  %v473_v22 = vld [vmem:[#allocation8 + $0x208] sm:$0xff] }
  0x7b   :  { %v1121_v45 = vpack.c.bf16 %v509_v30, %v508_v29  ;;  %v834_v46 = vsel %vm170_vm7, 1.0, %v1276_v51  ;;  %v324_v47 = vmul.f32 %v851_v31, %v1449_v15  ;;  %v835_v40 = vsel %vm175_vm8, 1.0, %v1276_v51 }
  0x7c   :  { %654 = vmatprep.mubr.f32.mxu1 %v377_v38  ;;  %v246_v50 = vmul.f32 %v834_v46, %v245_v32  ;;  %v250_v52 = vmul.f32 %v834_v46, %v249_v20  ;;  %v320_v54 = vmul.f32 %v851_v31, %v1496_v25  ;;  %v256_v55 = vmul.f32 %v835_v40, %v255_v41  ;;  %v474_v32 = vld [vmem:[#allocation8 + $0x210] sm:$0xff]  ;;  %v517_v46 = vld [vmem:[#allocation8 + $0x368] sm:$0xff] }
  0x7d   :  { %655 = vmatmul.mubr.f32.vlgmr.msra.gmra.mrb[0].mxu1 %v367_v12  ;;  %v259_v57 = vmul.f32 %v844_v28, %v1496_v25  ;;  %v330_v58 = vmul.f32 %v852_v42, %v131_v26  ;;  %v315_v62 = vmul.f32 %v314_v36, %v1478_v53  ;;  %v137_v0 = vsub.f32 %v1388_v27, %v827_v48  ;;  %v490_v28 = vld [vmem:[#allocation8 + $0x290] sm:$0xff]  ;;  %v860_v36 = vld [vmem:[#allocation7 + $0x18] ss:$0 sm:$0xff]  ;;  %v493_v48 = vld [vmem:[#allocation8 + $0x2a8] sm:$0xff] }
  0x7e   :  { %1116 = vmatpush3.bf16.msra.mxu1 %v1115_v13  ;;  %1015 = vmatprep.mubr.msk.f32.mxu1 %vm1278_vm3, %v1276_v51  ;;  %v247_v61 = vsub.f32 %v240_v35, %v246_v50  ;;  %vm178_vm9 = vcmp.ge.f32.partialorder %v131_v26, 0.0  ;;  %v1124_v37 = vpack.c.bf16 %v511_v49, %v510_v34  ;;  %v257_v1 = vsub.f32 %v250_v52, %v256_v55 }
  0x7f   :  { %1117 = vmatprep.subr.bf16.mxu1 %v1277_v23  ;;  %vm179_vm10 = vcmp.lt.f32.partialorder %v137_v0, 0.0  ;;  %v265_v7 = vmul.f32 %v845_v59, %v137_v0  ;;  %v260_v9 = vmul.f32 %v835_v40, %v259_v57  ;;  %v389_v10 = vmul.f32 %v1518_v60, %v1413_v44  ;;  %v515_v44 = vld [vmem:[#allocation8 + $0x358] sm:$0xff]  ;;  %v477_v57 = vld [vmem:[#allocation8 + $0x228] sm:$0xff] }
  0x80   :  { %v1149_v33 = vpop.eup %1148  ;;  %v321_v5 = vmul.f32 %v320_v54, %v247_v61  ;;  %v325_v6 = vmul.f32 %v324_v47, %v247_v61  ;;  %v331_v53 = vmul.f32 %v330_v58, %v257_v1  ;;  %v395_v11 = vmul.f32 %v859_v63, %v131_v26  ;;  %vm180_vm11 = vmand %vm178_vm9, %vm179_vm10  ;;  %v491_v26 = vld [vmem:[#allocation8 + $0x298] sm:$0xff]  ;;  %v492_v47 = vld [vmem:[#allocation8 + $0x2a0] sm:$0xff] }
  0x81   :  { %v75_v43 = vadd.f32 1.0, %v1149_v33  ;;  %v334_v38 = vmul.f32 %v852_v42, %v1452_v19  ;;  %v836_v13 = vsel %vm180_vm11, 1.0, %v1276_v51  ;;  %v1127_v16 = vpack.c.bf16 %v513_v3, %v512_v2  ;;  %v476_v54 = vld [vmem:[#allocation8 + $0x220] sm:$0xff]  ;;  %v518_v58 = vld [vmem:[#allocation8 + $0x370] sm:$0xff]  ;;  %v519_v59 = vld [vmem:[#allocation8 + $0x378] sm:$0xff] }
  0x82   :  { %1119 = vmatpush3.bf16.msra.mxu1 %v1118_v24  ;;  %v1525_v12 = vsub.f32 %v315_v62, %v321_v5  ;;  %v332_v17 = vsub.f32 %v325_v6, %v331_v53  ;;  %v266_v18 = vmul.f32 %v836_v13, %v265_v7  ;;  %v340_v21 = vmul.f32 %v853_v8, %v137_v0  ;;  %v514_v24 = vld [vmem:[#allocation8 + $0x350] sm:$0xff]  ;;  %v495_v62 = vld [vmem:[#allocation8 + $0x2b8] sm:$0xff]  ;;  %v496_v5 = vld [vmem:[#allocation8 + $0x2c0] sm:$0xff] }
  0x83   :  { %1120 = vmatprep.subr.bf16.mxu1 %v1277_v23  ;;  %1150 = vrcp.f32 %v75_v43  ;;  %v335_v19 = vmul.f32 %v334_v38, %v257_v1  ;;  %v1084_v51 = vpack.c.bf16 %v473_v22, %v472_v14  ;;  %v1130_v33 = vpack.c.bf16 %v515_v44, %v514_v24  ;;  %v475_v43 = vld [vmem:[#allocation8 + $0x218] sm:$0xff]  ;;  %v494_v61 = vld [vmem:[#allocation8 + $0x2b0] sm:$0xff]  ;;  %v497_v6 = vld [vmem:[#allocation8 + $0x2c8] sm:$0xff] }
  0x84   :  { %v390_v29 = vmul.f32 %v389_v10, %v1525_v12  ;;  %v396_v30 = vmul.f32 %v395_v11, %v332_v17  ;;  %v267_v20 = vsub.f32 %v260_v9, %v266_v18  ;;  %v1086_v42 = vpack.c.bf16 %v491_v26, %v490_v28  ;;  %v478_v2 = vld [vmem:[#allocation8 + $0x230] sm:$0xff]  ;;  %v479_v3 = vld [vmem:[#allocation8 + $0x238] sm:$0xff]  ;;  %v480_v53 = vld [vmem:[#allocation8 + $0x240] sm:$0xff] }
  0x85   :  { %v399_v49 = vmul.f32 %v859_v63, %v1449_v15  ;;  %v405_v50 = vmul.f32 %v860_v36, %v137_v0  ;;  %v1088_v52 = vpack.c.bf16 %v475_v43, %v474_v32  ;;  %v1092_v15 = vpack.c.bf16 %v477_v57, %v476_v54  ;;  %v481_v10 = vld [vmem:[#allocation8 + $0x248] sm:$0xff]  ;;  %v498_v11 = vld [vmem:[#allocation8 + $0x2d0] sm:$0xff]  ;;  %v499_v38 = vld [vmem:[#allocation8 + $0x2d8] sm:$0xff] }
  0x86   :  { %1122 = vmatpush3.bf16.msra.mxu1 %v1121_v45  ;;  %v341_v35 = vmul.f32 %v340_v21, %v267_v20  ;;  %v516_v45 = vld [vmem:[#allocation8 + $0x360] sm:$0xff]  ;;  %v397_v34 = vsub.f32 %v390_v29, %v396_v30  ;;  %v1136_v63 = vpack.c.bf16 %v519_v59, %v518_v58  ;;  %v1094_v0 = vpack.c.bf16 %v495_v62, %v494_v61  ;;  %v501_v18 = vld [vmem:[#allocation8 + $0x2e8] sm:$0xff]  ;;  %v502_v28 = vld [vmem:[#allocation8 + $0x2f0] sm:$0xff] }
  0x87   :  { %1123 = vmatprep.subr.bf16.mxu1 %v1277_v23  ;;  %v1133_v55 = vpack.c.bf16 %v517_v46, %v516_v45  ;;  %v1096_v8 = vpack.c.bf16 %v479_v3, %v478_v2  ;;  %v1098_v9 = vpack.c.bf16 %v497_v6, %v496_v5  ;;  %v1100_v13 = vpack.c.bf16 %v481_v10, %v480_v53  ;;  %v484_v24 = vld [vmem:[#allocation8 + $0x260] sm:$0xff]  ;;  %v485_v44 = vld [vmem:[#allocation8 + $0x268] sm:$0xff]  ;;  %v503_v26 = vld [vmem:[#allocation8 + $0x2f8] sm:$0xff] }
  0x88   :  { %v342_v40 = vsub.f32 %v335_v19, %v341_v35  ;;  %v1102_v14 = vpack.c.bf16 %v499_v38, %v498_v11  ;;  %v379_v29 = vmul.f32 %v1483_v56, %v1408_v39  ;;  %v385_v30 = vmul.f32 %v1518_v60, %v1496_v25 }
  0x89   :  { %v1108_v20 = vpack.c.bf16 %v485_v44, %v484_v24  ;;  %v1110_v19 = vpack.c.bf16 %v503_v26, %v502_v28 }
  0x8a   :  { %1125 = vmatpush3.bf16.msra.mxu1 %v1124_v37  ;;  %v400_v37 = vmul.f32 %v399_v49, %v332_v17  ;;  %v406_v1 = vmul.f32 %v405_v50, %v342_v40  ;;  %v483_v17 = vld [vmem:[#allocation8 + $0x258] sm:$0xff]  ;;  %v380_v32 = vmul.f32 %v379_v29, %v1490_v4 }
  0x8b   :  { %1126 = vmatprep.subr.bf16.mxu1 %v1277_v23 }
  0x8c   :  { %v407_v7 = vsub.f32 %v400_v37, %v406_v1 }
  0x8d   :  { %v1151_v31 = vpop.eup %1150 }
  0x8e   :  { %1128 = vmatpush3.bf16.msra.mxu1 %v1127_v16  ;;  %v77_v41 = vmul.f32 %v1151_v31, %v1388_v27  ;;  %v1090_v27 = vpack.c.bf16 %v493_v48, %v492_v47  ;;  %v482_v16 = vld [vmem:[#allocation8 + $0x250] sm:$0xff] }
  0x8f   :  { %1129 = vmatprep.subr.bf16.mxu1 %v1277_v23  ;;  %v1104_v21 = vpack.c.bf16 %v483_v17, %v482_v16  ;;  %v486_v31 = vld [vmem:[#allocation8 + $0x270] sm:$0xff] }
  0x90   :  { %585 = vmatmul.mubr.f32.vlgmr.msra.gmra.mrb[0].mxu0 %v77_v41 }
  0x91   :  { %1085 = vmatpush3.bf16.msra.mxu0 %v1084_v51  ;;  %724 = vmatprep.mubr.f32.mxu0 %v397_v34  ;;  %v487_v51 = vld [vmem:[#allocation8 + $0x278] sm:$0xff] }
  0x92   :  { %1131 = vmatpush3.bf16.msra.mxu1 %v1130_v33  ;;  %1087 = vmatprep.subr.bf16.mxu0 %v1086_v42  ;;  %v386_v33 = vmul.f32 %v385_v30, %v1525_v12  ;;  %v1112_v35 = vpack.c.bf16 %v487_v51, %v486_v31 }
  0x93   :  { %1132 = vmatprep.subr.bf16.mxu1 %v1277_v23 }
  0x94   :  { %v387_v36 = vsub.f32 %v380_v32, %v386_v33 }
  0x95   :  { %1089 = vmatpush3.bf16.msra.mxu0 %v1088_v52 }
  0x96   :  { %1134 = vmatpush3.bf16.msra.mxu1 %v1133_v55  ;;  %1091 = vmatprep.subr.bf16.mxu0 %v1090_v27 }
  0x97   :  { %1135 = vmatprep.subr.bf16.mxu1 %v1277_v23  ;;  %v500_v23 = vld [vmem:[#allocation8 + $0x2e0] sm:$0xff] }
  0x98   :  { %v1106_v22 = vpack.c.bf16 %v501_v18, %v500_v23 }
  0x99   :  { %1093 = vmatpush3.bf16.msra.mxu0 %v1092_v15 }
  0x9a   :  { %1137 = vmatpush3.bf16.msra.mxu1 %v1136_v63  ;;  %1095 = vmatprep.subr.bf16.mxu0 %v1094_v0 }
  0x9d   :  { %1016 = vmatmul.mubr.f32.vlgmr.msra.gmra.mrb[2].mxu1 %v407_v7  ;;  %1097 = vmatpush3.bf16.msra.mxu0 %v1096_v8 }
  0x9e   :  { %1099 = vmatprep.subr.bf16.mxu0 %v1098_v9 }
  0xa1   :  { %1101 = vmatpush3.bf16.msra.mxu0 %v1100_v13 }
  0xa2   :  { %1103 = vmatprep.subr.bf16.mxu0 %v1102_v14 }
  0xa5   :  { %1105 = vmatpush3.bf16.msra.mxu0 %v1104_v21 }
  0xa6   :  { %1107 = vmatprep.subr.bf16.mxu0 %v1106_v22 }
  0xa9   :  { %1109 = vmatpush3.bf16.msra.mxu0 %v1108_v20 }
  0xaa   :  { %1111 = vmatprep.subr.bf16.mxu0 %v1110_v19 }
  0xad   :  { %1113 = vmatpush3.bf16.msra.mxu0 %v1112_v35 }
  0xb0   :  { %725 = vmatmul.mubr.f32.vlgmr.msra.gmra.mrb[2].mxu0 %v387_v36 }
 0x150   :  { %v928_v39 = vpop.f32.mrb[0].mxu1 }
 0x151   :  { %v929_v56 = vpop.f32.mrb[1].mxu1 }
 0x152   :  { %v930_v41 = vadd.f32 %v929_v56, %v928_v39 }
 0x163   :  { %v893_v25 = vpop.f32.mrb[0].mxu0 }
 0x164   :  { %v894_v60 = vpop.f32.mrb[1].mxu0 }
 0x165   :  { %v895_v42 = vadd.f32 %v894_v60, %v893_v25 }
 0x167   :  { %v657_v43 = vadd.f32 %v930_v41, %v895_v42 }
 0x170   :  { %v796_v45 = vpop.f32.mrb[2].mxu1 }
 0x171   :  { %v1017_v46 = vpop.f32.mrb[3].mxu1 }
 0x183   :  { %v963_v47 = vpop.f32.mrb[2].mxu0 }
 0x184   :  { %v964_v48 = vpop.f32.mrb[3].mxu0 }
 0x185   :  { %v965_v4 = vadd.f32 %v964_v48, %v963_v47 }
 0x187   :  { %v727_v12 = vadd.f32 %v965_v4, %v657_v43 }
 0x189   :  { %v797_v34 = vadd.f32 %v796_v45, %v727_v12 }
 0x18b   :  { %800 = vst [vmem:[#allocation10] sm:$0xff] %v797_v34 }
 0x18c   :  { %1251 = shalt.err (!%p1248_p8)
}
 0x18d   :  { %s1252_s1 = scalar_lea.hbm %s1558_s4, 128 }
 0x18e   :  { %p1253_p9 = scmp.ne.s32.totalorder %s1558_s4, %s1252_s1  ;;  %p1256_p10 = scmp.lt.u32.totalorder %s1252_s1, %s1558_s4 }
 0x190   :  { %p1258_p11 = pnand %p1256_p10, %p1253_p9 }
 0x192   :  { %1261 = shalt.err (!%p1258_p11)
}
 0x193   :  { %810 = dma.vmem_to_hbm [thread:$0]  %s808_s25, 128, %s1558_s4, [#allocation4]  }
 0x194   :  { %1268 = dma.done.wait [#allocation4], 128  }
 0x195   :  { %1269 = vsyncadd [#allocation4], 4294967168 }
 0x196   :  { %814 = vsyncpa [#allocation3], 1 }
 0x197   :  { %815 = vsyncpa [#allocation6], 1 }
 0x198   :  { %816 = vsyncpa [#allocation9], 1 }
 0x199   :  { %817 = vsyncpa [#allocation4], 1 }

</bundles_post_ra>
